<compile_context>
chip_gen: v7x
topology: tpu7x:2x2x1
jax: 0.10.0
libtpu: 0.0.40
codegen_flags: <defaults>
</compile_context>

<pallas_src>
import jax
import jax.numpy as jnp
from jax.experimental import pallas as pl
from jax.experimental.pallas import tpu as pltpu

HIDDEN = 128


def _round_up(n, m):
    return ((n + m - 1) // m) * m


def _dqn_mlp_kernel(x_ref, w1_ref, w23_ref, b_ref, o_ref):
    # Fused 3-layer MLP for one batch tile.  All matmuls hit the MXU in bf16
    # with f32 accumulation; bias + ReLU run on the VPU.
    x = x_ref[...].astype(jnp.bfloat16)                       # (TB, S) bf16

    # Static slices of packed weights/biases (lane-aligned -> free).
    w2 = w23_ref[:, 0:HIDDEN]                                  # (128, 128) bf16
    w3 = w23_ref[:, HIDDEN:]                                   # (128, A_pad) bf16
    b1 = b_ref[0:1, 0:HIDDEN]                                  # (1, 128) f32
    b2 = b_ref[1:2, 0:HIDDEN]                                  # (1, 128) f32
    b3 = b_ref[2:3, :]                                         # (1, A_pad) f32

    h1 = jnp.dot(x, w1_ref[...], preferred_element_type=jnp.float32)
    h1 = jnp.maximum(h1 + b1, 0.0).astype(jnp.bfloat16)        # (TB, 128)

    h2 = jnp.dot(h1, w2, preferred_element_type=jnp.float32)
    h2 = jnp.maximum(h2 + b2, 0.0).astype(jnp.bfloat16)        # (TB, 128)

    out = jnp.dot(h2, w3, preferred_element_type=jnp.float32)
    out = out + b3                                             # (TB, A_pad) f32

    # Lane-dense store: last dim is a multiple of 128 -> unmasked vst.
    o_ref[...] = out.astype(o_ref.dtype)


def prepare_params(params):
    """One-time prep: bf16 cast, output-dim padding, weight/bias packing.

    Call once after init / after each optimizer step; the result is what the
    forward pass consumes (no per-call weight rewrites).
    """
    S = params["w1"].shape[0]
    A = params["w3"].shape[1]
    A_pad = _round_up(max(A, 1), 128)

    w1 = params["w1"].astype(jnp.bfloat16)                     # (S, 128)

    # Pack [w2 | w3_pad] -> (128, 128 + A_pad) bf16.
    w23 = jnp.zeros((HIDDEN, HIDDEN + A_pad), jnp.bfloat16)
    w23 = w23.at[:, :HIDDEN].set(params["w2"].astype(jnp.bfloat16))
    w23 = w23.at[:, HIDDEN:HIDDEN + A].set(params["w3"].astype(jnp.bfloat16))

    # Pack [b1; b2; b3_pad] -> (3, A_pad) f32.  (A_pad >= 128 == HIDDEN.)
    b = jnp.zeros((3, A_pad), jnp.float32)
    b = b.at[0, :HIDDEN].set(params["b1"].reshape(HIDDEN).astype(jnp.float32))
    b = b.at[1, :HIDDEN].set(params["b2"].reshape(HIDDEN).astype(jnp.float32))
    b = b.at[2, :A].set(params["b3"].reshape(A).astype(jnp.float32))

    return {"w1": w1, "w23": w23, "b": b, "S": S, "A": A, "A_pad": A_pad}


def _choose_batch_tile(B):
    """Batch tile: 1 step for tiny latency-bound batches; otherwise 2 steps
    (keeps both v7x TensorCores busy); capped at 2048 rows for v5e VMEM /
    pipelining on huge batches.  Rounded to 16 (bf16 sublane packing)."""
    if B <= 16:
        return _round_up(max(B, 1), 8)
    tb = _round_up(-(-B // 2), 16)
    return min(tb, 2048)


def dqn_forex_forward(x, prep, *, batch_tile=None):
    """x: (B, num_states) f32.  prep: output of prepare_params()."""
    B, S = x.shape
    assert S == prep["S"]
    A, A_pad = prep["A"], prep["A_pad"]

    TB = _choose_batch_tile(B) if batch_tile is None else _round_up(batch_tile, 16)
    B_pad = _round_up(B, TB)
    grid = (B_pad // TB,)

    # Pad batch only when needed (keeps the fast path free of extra HBM passes).
    x_p = x if B_pad == B else jnp.pad(x, ((0, B_pad - B), (0, 0)))

    cost = pl.CostEstimate(
        flops=2 * B_pad * (S * HIDDEN + HIDDEN * HIDDEN + HIDDEN * A_pad),
        transcendentals=0,
        bytes_accessed=(B_pad * S * 4            # x (f32 in)
                        + prep["w1"].size * 2    # w1 bf16
                        + prep["w23"].size * 2   # packed w2|w3 bf16
                        + prep["b"].size * 4     # packed biases f32
                        + B_pad * A_pad * 4),    # output f32
    )

    out_padded = pl.pallas_call(
        _dqn_mlp_kernel,
        out_shape=jax.ShapeDtypeStruct((B_pad, A_pad), jnp.float32),
        grid=grid,
        in_specs=[
            # activations: tiled over batch
            pl.BlockSpec((TB, S), lambda i: (i, 0)),
            # packed weights/biases: constant block index -> DMA'd once,
            # VMEM-resident across the batch sweep
            pl.BlockSpec((S, HIDDEN), lambda i: (0, 0)),
            pl.BlockSpec((HIDDEN, HIDDEN + A_pad), lambda i: (0, 0)),
            pl.BlockSpec((3, A_pad), lambda i: (0, 0)),
        ],
        out_specs=pl.BlockSpec((TB, A_pad), lambda i: (i, 0)),
        compiler_params=pltpu.CompilerParams(
            # batch axis is independent -> shard across v7x's 2 TensorCores
            dimension_semantics=("parallel",),
        ),
        cost_estimate=cost,
    )(x_p, prep["w1"], prep["w23"], prep["b"])

    # Drop batch padding and padded Q-value columns before anything (e.g. an
    # argmax action selection) sees them.
    return out_padded[:B, :A]


def init_params(key, num_states, num_actions):
    """Deterministic init mimicking PyTorch Linear default U[-1/sqrt(fan_in), +]."""
    ks = jax.random.split(key, 6)

    def lin(kw, kb, fan_in, fan_out):
        bound = 1.0 / jnp.sqrt(jnp.float32(fan_in))
        w = jax.random.uniform(kw, (fan_in, fan_out), jnp.float32, -bound, bound)
        b = jax.random.uniform(kb, (1, fan_out), jnp.float32, -bound, bound)
        return w, b

    w1, b1 = lin(ks[0], ks[1], num_states, HIDDEN)
    w2, b2 = lin(ks[2], ks[3], HIDDEN, HIDDEN)
    w3, b3 = lin(ks[4], ks[5], HIDDEN, num_actions)
    return {"w1": w1, "b1": b1, "w2": w2, "b2": b2, "w3": w3, "b3": b3}


def reference_forward_f32(x, p):
    """Pure-f32 reference (matches the PyTorch module's f32 math)."""
    h1 = jnp.maximum(x @ p["w1"] + p["b1"], 0.0)
    h2 = jnp.maximum(h1 @ p["w2"] + p["b2"], 0.0)
    return h2 @ p["w3"] + p["b3"]


def reference_forward_bf16(x, p):
    """Reference applying the same bf16 input/weight rounding as the kernel."""
    xb = x.astype(jnp.bfloat16).astype(jnp.float32)
    w1 = p["w1"].astype(jnp.bfloat16).astype(jnp.float32)
    w2 = p["w2"].astype(jnp.bfloat16).astype(jnp.float32)
    w3 = p["w3"].astype(jnp.bfloat16).astype(jnp.float32)
    h1 = jnp.maximum(xb @ w1 + p["b1"], 0.0)
    h1 = h1.astype(jnp.bfloat16).astype(jnp.float32)
    h2 = jnp.maximum(h1 @ w2 + p["b2"], 0.0)
    h2 = h2.astype(jnp.bfloat16).astype(jnp.float32)
    return h2 @ w3 + p["b3"]


if __name__ == "__main__":
    num_states = 32
    num_actions = 4
    batch = 8

    key = jax.random.PRNGKey(0)
    k_x, k_p = jax.random.split(key)
    x = jax.random.normal(k_x, (batch, num_states), jnp.float32)
    params = init_params(k_p, num_states, num_actions)
    prep = prepare_params(params)          # one-time weight prep (hoisted)

    out = dqn_forex_forward(x, prep)
    out = jax.block_until_ready(out)
    assert out.shape == (batch, num_actions)

    # Tight check vs. a reference with identical bf16 rounding (catches kernel
    # / packing / padding bugs); loose check vs. pure-f32 PyTorch-equivalent
    # math (tolerance accounts for bf16 MXU inputs — note Q-values differ from
    # f32 by ~1e-2 relative, which can flip argmax between near-tied actions).
    ref_bf16 = reference_forward_bf16(x, params)
    ref_f32 = reference_forward_f32(x, params)
    assert jnp.allclose(out, ref_bf16, atol=2e-3, rtol=2e-3), "mismatch vs bf16 reference"
    assert jnp.allclose(out, ref_f32, atol=5e-2, rtol=5e-2), "mismatch vs f32 reference"

    # Also exercise the multi-step (>=2 grid steps) path with batch padding.
    batch2 = 100
    x2 = jax.random.normal(jax.random.PRNGKey(1), (batch2, num_states), jnp.float32)
    out2 = jax.block_until_ready(dqn_forex_forward(x2, prep))
    assert out2.shape == (batch2, num_actions)
    assert jnp.allclose(out2, reference_forward_bf16(x2, params), atol=2e-3, rtol=2e-3)

    print("KERNEL_OK")
</pallas_src>

<mosaic_0001>
module attributes {stable_mosaic.version = 11 : i64} {
  func.func @_dqn_mlp_kernel(%arg0: i32, %arg1: memref<8x32xf32, #tpu.memory_space<vmem>>, %arg2: memref<32x128xbf16, #tpu.memory_space<vmem>>, %arg3: memref<128x256xbf16, #tpu.memory_space<vmem>>, %arg4: memref<3x128xf32, #tpu.memory_space<vmem>>, %arg5: memref<8x128xf32, #tpu.memory_space<vmem>>) attributes {dimension_semantics = [#tpu.dimension_semantics<parallel>], iteration_bounds = array<i64: 1>, scalar_prefetch = 0 : i64, scratch_operands = 0 : i64, tpu.core_type = #tpu.core_type<tc>, window_params = [{transform_indices = @transform_0, window_bounds = array<i64: 8, 32>}, {pipeline_mode = #tpu.pipeline_mode<synchronous>, transform_indices = @transform_1, window_bounds = array<i64: 32, 128>}, {pipeline_mode = #tpu.pipeline_mode<synchronous>, transform_indices = @transform_2, window_bounds = array<i64: 128, 256>}, {pipeline_mode = #tpu.pipeline_mode<synchronous>, transform_indices = @transform_3, window_bounds = array<i64: 3, 128>}, {transform_indices = @transform_4, window_bounds = array<i64: 8, 128>}]} {
    %c0 = arith.constant 0 : index
    %c0_0 = arith.constant 0 : index
    %0 = vector.load %arg1[%c0, %c0_0] : memref<8x32xf32, #tpu.memory_space<vmem>>, vector<8x32xf32>
    %1 = arith.truncf %0 : vector<8x32xf32> to vector<8x32xbf16>
    %c0_1 = arith.constant 0 : index
    %c0_2 = arith.constant 0 : index
    %2 = vector.load %arg3[%c0_1, %c0_2] : memref<128x256xbf16, #tpu.memory_space<vmem>>, vector<128x128xbf16>
    %c0_3 = arith.constant 0 : index
    %c128 = arith.constant 128 : index
    %3 = vector.load %arg3[%c0_3, %c128] : memref<128x256xbf16, #tpu.memory_space<vmem>>, vector<128x128xbf16>
    %c0_4 = arith.constant 0 : index
    %c0_5 = arith.constant 0 : index
    %4 = vector.load %arg4[%c0_4, %c0_5] : memref<3x128xf32, #tpu.memory_space<vmem>>, vector<1x128xf32>
    %c1 = arith.constant 1 : index
    %c0_6 = arith.constant 0 : index
    %5 = vector.load %arg4[%c1, %c0_6] : memref<3x128xf32, #tpu.memory_space<vmem>>, vector<1x128xf32>
    %c2 = arith.constant 2 : index
    %c0_7 = arith.constant 0 : index
    %6 = vector.load %arg4[%c2, %c0_7] : memref<3x128xf32, #tpu.memory_space<vmem>>, vector<1x128xf32>
    %c0_8 = arith.constant 0 : index
    %c0_9 = arith.constant 0 : index
    %7 = vector.load %arg2[%c0_8, %c0_9] : memref<32x128xbf16, #tpu.memory_space<vmem>>, vector<32x128xbf16>
    %cst = arith.constant dense<0.000000e+00> : vector<8x128xf32>
    %8 = tpu.matmul %1, %7, %cst {dimension_numbers = #tpu.dot_dimension_numbers<[1], [0], [0], [1], [0, 0, 1, 1], [], []>} : vector<8x32xbf16>, vector<32x128xbf16>, vector<8x128xf32> -> vector<8x128xf32>
    %9 = vector.broadcast %4 : vector<1x128xf32> to vector<8x128xf32>
    %10 = arith.addf %8, %9 : vector<8x128xf32>
    %cst_10 = arith.constant 0.000000e+00 : f32
    %11 = vector.broadcast %cst_10 : f32 to vector<8x128xf32>
    %12 = arith.maximumf %10, %11 : vector<8x128xf32>
    %13 = arith.truncf %12 : vector<8x128xf32> to vector<8x128xbf16>
    %cst_11 = arith.constant dense<0.000000e+00> : vector<8x128xf32>
    %14 = tpu.matmul %13, %2, %cst_11 {dimension_numbers = #tpu.dot_dimension_numbers<[1], [0], [0], [1], [0, 0, 1, 1], [], []>} : vector<8x128xbf16>, vector<128x128xbf16>, vector<8x128xf32> -> vector<8x128xf32>
    %15 = vector.broadcast %5 : vector<1x128xf32> to vector<8x128xf32>
    %16 = arith.addf %14, %15 : vector<8x128xf32>
    %cst_12 = arith.constant 0.000000e+00 : f32
    %17 = vector.broadcast %cst_12 : f32 to vector<8x128xf32>
    %18 = arith.maximumf %16, %17 : vector<8x128xf32>
    %19 = arith.truncf %18 : vector<8x128xf32> to vector<8x128xbf16>
    %cst_13 = arith.constant dense<0.000000e+00> : vector<8x128xf32>
    %20 = tpu.matmul %19, %3, %cst_13 {dimension_numbers = #tpu.dot_dimension_numbers<[1], [0], [0], [1], [0, 0, 1, 1], [], []>} : vector<8x128xbf16>, vector<128x128xbf16>, vector<8x128xf32> -> vector<8x128xf32>
    %21 = vector.broadcast %6 : vector<1x128xf32> to vector<8x128xf32>
    %22 = arith.addf %20, %21 : vector<8x128xf32>
    %c0_14 = arith.constant 0 : index
    %c0_15 = arith.constant 0 : index
    %23 = vector.load %arg5[%c0_14, %c0_15] : memref<8x128xf32, #tpu.memory_space<vmem>>, vector<8x128xf32>
    tpu.vector_store %arg5[%c0_14, %c0_15], %22 {strides = array<i32>} : memref<8x128xf32, #tpu.memory_space<vmem>>, vector<8x128xf32>,
    return
  }
  func.func @transform_0(%arg0: i32) -> (i32, i32) {
    %c0_i32 = arith.constant 0 : i32
    %c0_i32_0 = arith.constant 0 : i32
    return %arg0, %c0_i32 : i32, i32
  }
  func.func @transform_1(%arg0: i32) -> (i32, i32) {
    %c0_i32 = arith.constant 0 : i32
    %c0_i32_0 = arith.constant 0 : i32
    %c0_i32_1 = arith.constant 0 : i32
    return %c0_i32, %c0_i32_0 : i32, i32
  }
  func.func @transform_2(%arg0: i32) -> (i32, i32) {
    %c0_i32 = arith.constant 0 : i32
    %c0_i32_0 = arith.constant 0 : i32
    %c0_i32_1 = arith.constant 0 : i32
    return %c0_i32, %c0_i32_0 : i32, i32
  }
  func.func @transform_3(%arg0: i32) -> (i32, i32) {
    %c0_i32 = arith.constant 0 : i32
    %c0_i32_0 = arith.constant 0 : i32
    %c0_i32_1 = arith.constant 0 : i32
    return %c0_i32, %c0_i32_0 : i32, i32
  }
  func.func @transform_4(%arg0: i32) -> (i32, i32) {
    %c0_i32 = arith.constant 0 : i32
    %c0_i32_0 = arith.constant 0 : i32
    return %arg0, %c0_i32 : i32, i32
  }
}

</mosaic_0001>

<bundles_post_ra>
// kernel: tpu_custom_call.1
= control target key start
LH: loop header
LB: loop body
LE: loop exit
PB: predicated region body
PF: predicated region fallthrough
CT: control target
= control target key end

     0   :  { %9 = vsyncpa [#allocation3], 0  ;;  %s693_s0 = inlined_call_operand.hbm [shape: f32[8,32], index: 0, kind: input, shape index: {}]   ;;  %s694_s1 = inlined_call_operand.hbm [shape: bf16[32,128], index: 1, kind: input, shape index: {}]   ;;  %s695_s2 = inlined_call_operand.hbm [shape: bf16[128,256], index: 2, kind: input, shape index: {}]   ;;  %s696_s3 = inlined_call_operand.vmem [shape: f32[3,128], index: 3, kind: input, shape index: {}]   ;;  %s697_s4 = inlined_call_operand.hbm [shape: f32[8,128], index: 4, kind: output, shape index: {}]  }
   0x1   :  { %10 = vsyncpa [#allocation6], 0 }
   0x2   :  { %11 = vsyncpa [#allocation4], 0  ;;  %s577_s15 = smov [#allocation5]   ;;  %s483_s19 = scalar_lea.hbm %s694_s1, 256 }
   0x3   :  { %s27_s16 = sshll.u32 %s577_s15, 4  ;;  %p484_p0 = scmp.ne.s32.totalorder %s694_s1, %s483_s19  ;;  %s28_s16 = int_to_ptr.vmem [resolvable:$true] %s27_s16 }
   0x4   :  { %p487_p1 = scmp.lt.u32.totalorder %s483_s19, %s694_s1 }
   0x6   :  { %p489_p2 = pnand %p487_p1, %p484_p0 }
   0x8   :  { %492 = shalt.err (!%p489_p2)
}
   0x9   :  { %s493_s24 = scalar_lea.vmem %s28_s16, 256  ;;  %p498_p4 = scmp.lt.s32.totalorder %s28_s16, %s28_s16 }
   0xa   :  { %p494_p3 = scmp.ne.s32.totalorder %s28_s16, %s493_s24  ;;  %p499_p5 = scmp.lt.s32.totalorder %s493_s24, %s493_s24 }
   0xc   :  { %p500_p6 = por %p499_p5, %p498_p4 }
   0xe   :  { %p501_p7 = pnand %p500_p6, %p494_p3 }
  0x10   :  { %504 = shalt.err (!%p501_p7)
}
  0x11   :  { %s578_s25 = smov 64   ;;  %s579_s26 = smov 4  }
  0x12   :  { %33 = dma.hbm_to_vmem [thread:$0]  %s694_s1, 256, %s28_s16, [#allocation6], %s578_s25, %s578_s25, %s579_s26  }
  0x13   :  { %s580_s29 = smov [#allocation2]   ;;  %s581_s5 = smov [#allocation7]  }
  0x14   :  { %s18_s30 = sshll.u32 %s580_s29, 4  ;;  %s39_s6 = sshll.u32 %s581_s5, 4  ;;  %s19_s30 = int_to_ptr.vmem [resolvable:$true] %s18_s30  ;;  %s40_s6 = int_to_ptr.vmem [resolvable:$true] %s39_s6 }
  0x15   :  { %s505_s9 = scalar_lea.hbm %s693_s0, 128 }
  0x16   :  { %p506_p8 = scmp.ne.s32.totalorder %s693_s0, %s505_s9  ;;  %p509_p9 = scmp.lt.u32.totalorder %s505_s9, %s693_s0 }
  0x18   :  { %p511_p10 = pnand %p509_p9, %p506_p8 }
  0x1a   :  { %514 = shalt.err (!%p511_p10)
}
  0x1b   :  { %s515_s1 = scalar_lea.vmem %s19_s30, 128  ;;  %p520_p12 = scmp.lt.s32.totalorder %s19_s30, %s19_s30 }
  0x1c   :  { %p516_p11 = scmp.ne.s32.totalorder %s19_s30, %s515_s1  ;;  %p521_p13 = scmp.lt.s32.totalorder %s515_s1, %s515_s1 }
  0x1e   :  { %p522_p0 = por %p521_p13, %p520_p12 }
  0x20   :  { %p523_p1 = pnand %p522_p0, %p516_p11 }
  0x22   :  { %526 = shalt.err (!%p523_p1)
}
  0x23   :  { %21 = dma.hbm_to_vmem [thread:$0]  %s693_s0, 128, %s19_s30, [#allocation3]  }
  0x24   :  { %s527_s18 = scalar_lea.hbm %s695_s2, 2048 }
  0x25   :  { %p528_p2 = scmp.ne.s32.totalorder %s695_s2, %s527_s18  ;;  %p531_p3 = scmp.lt.u32.totalorder %s527_s18, %s695_s2 }
  0x27   :  { %p533_p4 = pnand %p531_p3, %p528_p2 }
  0x29   :  { %536 = shalt.err (!%p533_p4)
}
  0x2a   :  { %s537_s23 = scalar_lea.vmem %s40_s6, 2048  ;;  %p542_p6 = scmp.lt.s32.totalorder %s40_s6, %s40_s6 }
  0x2b   :  { %p538_p5 = scmp.ne.s32.totalorder %s40_s6, %s537_s23  ;;  %p543_p7 = scmp.lt.s32.totalorder %s537_s23, %s537_s23 }
  0x2d   :  { %p544_p8 = por %p543_p7, %p542_p6 }
  0x2f   :  { %p545_p9 = pnand %p544_p8, %p538_p5 }
  0x31   :  { %548 = shalt.err (!%p545_p9)
}
  0x32   :  { %s582_s0 = smov 128   ;;  %s583_s24 = smov 8  }
  0x33   :  { %45 = dma.hbm_to_vmem [thread:$0]  %s695_s2, 2048, %s40_s6, [#allocation6], %s582_s0, %s582_s0, %s583_s24  }
  0x34   :  { %571 = dma.done.wait [#allocation3], 128  }
  0x35   :  { %572 = vsyncadd [#allocation3], 4294967168 }
  0x36   :  { %573 = dma.done.wait [#allocation6], 2304  }
  0x37   :  { %574 = vsyncadd [#allocation6], 4294964992  ;;  %v584_v0 = vmov 0.0   ;;  %vm585_vm0 = vmmov 0   ;;  %v465_v1 = vld [vmem:[#allocation5] sm:$0xff]   ;;  %v466_v2 = vld [vmem:[#allocation5 + $0x8] sm:$0xff]  }
  0x38   :  { %407 = vmatprep.subr.bf16.mxu0 %v584_v0  ;;  %411 = vmatprep.mubr.msk.bf16.mxu0 %vm585_vm0, %v584_v0  ;;  %v58_v3 = vld [vmem:[#allocation2] sm:$0xff]  ;;  %v468_v6 = vld [vmem:[#allocation7 + $0x10] ss:$8 sps:$4 sm:$0xff]   ;;  %vm115_vm1 = vcmask 261120   ;;  %v476_v14 = vld [vmem:[#allocation7 + $0x14] ss:$8 sps:$4 sm:$0xff]  }
  0x39   :  { %415 = vmatprep.subr.bf16.mxu1 %v584_v0  ;;  %431 = vmatprep.mubr.msk.bf16.mxu1 %vm585_vm0, %v584_v0  ;;  %v467_v4 = vld [vmem:[#allocation7] ss:$8 sps:$4 sm:$0xff]   ;;  %v59_v5 = vpack.c.bf16 %v58_v3, %v58_v3  ;;  %v470_v8 = vld [vmem:[#allocation7 + $0x30] ss:$8 sps:$4 sm:$0xff]   ;;  %v475_v13 = vld [vmem:[#allocation7 + $0x4] ss:$8 sps:$4 sm:$0xff]  }
  0x3a   :  { %408 = vmatpush3.bf16.msra.mxu0 %v465_v1  ;;  %416 = vmatpush3.bf16.msra.mxu1 %v467_v4  ;;  %v469_v7 = vld [vmem:[#allocation7 + $0x20] ss:$8 sps:$4 sm:$0xff]   ;;  %v472_v10 = vld [vmem:[#allocation7 + $0x50] ss:$8 sps:$4 sm:$0xff]   ;;  %v477_v15 = vld [vmem:[#allocation7 + $0x24] ss:$8 sps:$4 sm:$0xff]  }
  0x3b   :  { %409 = vmatprep.subr.bf16.mxu0 %v584_v0  ;;  %417 = vmatprep.subr.bf16.mxu1 %v584_v0  ;;  %v471_v9 = vld [vmem:[#allocation7 + $0x40] ss:$8 sps:$4 sm:$0xff]   ;;  %v474_v12 = vld [vmem:[#allocation7 + $0x70] ss:$8 sps:$4 sm:$0xff]   ;;  %v478_v16 = vld [vmem:[#allocation7 + $0x34] ss:$8 sps:$4 sm:$0xff]  }
  0x3c   :  { %v473_v11 = vld [vmem:[#allocation7 + $0x60] ss:$8 sps:$4 sm:$0xff]   ;;  %v479_v17 = vld [vmem:[#allocation7 + $0x44] ss:$8 sps:$4 sm:$0xff]   ;;  %v480_v18 = vld [vmem:[#allocation7 + $0x54] ss:$8 sps:$4 sm:$0xff]  }
  0x3d   :  { %v364_v19 = vld [vmem:[%s696_s3] ss:$0 sm:$0xff]  ;;  %v481_v27 = vld [vmem:[#allocation7 + $0x64] ss:$8 sps:$4 sm:$0xff]   ;;  %v482_v28 = vld [vmem:[#allocation7 + $0x74] ss:$8 sps:$4 sm:$0xff]  }
  0x3e   :  { %410 = vmatpush3.bf16.msra.mxu0 %v466_v2  ;;  %418 = vmatpush3.bf16.msra.mxu1 %v468_v6  ;;  %v368_v29 = vld [vmem:[%s696_s3 + $0x1] ss:$0 sm:$0xff]  ;;  %v377_v37 = vld [vmem:[%s696_s3 + $0x2] ss:$0 sm:$0xff]  ;;  %s586_s6 = smov [#allocation8]  }
  0x3f   :  { %435 = vmatprep.subr.bf16.mxu0 %v584_v0  ;;  %419 = vmatprep.subr.bf16.mxu1 %v584_v0  ;;  %s354_s7 = sshll.u32 %s586_s6, 4  ;;  %s355_s7 = int_to_ptr.vmem [resolvable:$true] %s354_s7 }
  0x40   :  { %s549_s8 = scalar_lea.vmem %s355_s7, 128  ;;  %p554_p11 = scmp.lt.s32.totalorder %s355_s7, %s355_s7 }
  0x41   :  { %412 = vmatmul.mubr.msk.bf16.vlgmr.msra.gmra.mrb[0].mxu0 %vm115_vm1, %v59_v5  ;;  %p550_p10 = scmp.ne.s32.totalorder %s355_s7, %s549_s8  ;;  %p555_p12 = scmp.lt.s32.totalorder %s549_s8, %s549_s8 }
  0x42   :  { %451 = vmatprep.mubr.msk.bf16.mxu0 %vm585_vm0, %v584_v0  ;;  %420 = vmatpush3.bf16.msra.mxu1 %v469_v7 }
  0x43   :  { %421 = vmatprep.subr.bf16.mxu1 %v584_v0  ;;  %436 = vmatpush3.bf16.msra.mxu0 %v475_v13  ;;  %p556_p13 = por %p555_p12, %p554_p11 }
  0x44   :  { %437 = vmatprep.subr.bf16.mxu0 %v584_v0 }
  0x45   :  { %p557_p0 = pnand %p556_p13, %p550_p10 }
  0x46   :  { %422 = vmatpush3.bf16.msra.mxu1 %v470_v8 }
  0x47   :  { %423 = vmatprep.subr.bf16.mxu1 %v584_v0  ;;  %438 = vmatpush3.bf16.msra.mxu0 %v476_v14 }
  0x48   :  { %439 = vmatprep.subr.bf16.mxu0 %v584_v0 }
  0x4a   :  { %424 = vmatpush3.bf16.msra.mxu1 %v471_v9 }
  0x4b   :  { %425 = vmatprep.subr.bf16.mxu1 %v584_v0  ;;  %440 = vmatpush3.bf16.msra.mxu0 %v477_v15 }
  0x4c   :  { %441 = vmatprep.subr.bf16.mxu0 %v584_v0 }
  0x4e   :  { %426 = vmatpush3.bf16.msra.mxu1 %v472_v10 }
  0x4f   :  { %427 = vmatprep.subr.bf16.mxu1 %v584_v0  ;;  %442 = vmatpush3.bf16.msra.mxu0 %v478_v16 }
  0x50   :  { %443 = vmatprep.subr.bf16.mxu0 %v584_v0 }
  0x52   :  { %428 = vmatpush3.bf16.msra.mxu1 %v473_v11 }
  0x53   :  { %429 = vmatprep.subr.bf16.mxu1 %v584_v0  ;;  %444 = vmatpush3.bf16.msra.mxu0 %v479_v17 }
  0x54   :  { %445 = vmatprep.subr.bf16.mxu0 %v584_v0 }
  0x56   :  { %430 = vmatpush3.bf16.msra.mxu1 %v474_v12 }
  0x57   :  { %446 = vmatpush3.bf16.msra.mxu0 %v480_v18 }
  0x58   :  { %447 = vmatprep.subr.bf16.mxu0 %v584_v0 }
  0x5b   :  { %448 = vmatpush3.bf16.msra.mxu0 %v481_v27 }
  0x5c   :  { %449 = vmatprep.subr.bf16.mxu0 %v584_v0 }
  0x5f   :  { %450 = vmatpush3.bf16.msra.mxu0 %v482_v28 }
 0x114   :  { %v153_v20 = vpop.f32.mrb[0].mxu0 }
 0x115   :  { %v154_v21 = vadd.f32 %v364_v19, %v153_v20  ;;  %v413_v22 = vpop.f32.mrb[1].mxu0 }
 0x116   :  { %v156_v23 = vpop.f32.mrb[2].mxu0 }
 0x117   :  { %v159_v24 = vmax.f32 %v154_v21, 0.0  ;;  %v414_v25 = vpop.f32.mrb[3].mxu0 }
 0x119   :  { %v160_v26 = vpack.c.bf16 %v159_v24, %v159_v24 }
 0x11b   :  { %432 = vmatmul.mubr.bf16.vlgmr.msra.gmra.mrb[0].mxu1 %v160_v26 }
 0x1ee   :  { %v247_v30 = vpop.f32.mrb[0].mxu1 }
 0x1ef   :  { %v248_v31 = vadd.f32 %v368_v29, %v247_v30  ;;  %v433_v32 = vpop.f32.mrb[1].mxu1 }
 0x1f0   :  { %v250_v33 = vpop.f32.mrb[2].mxu1 }
 0x1f1   :  { %v253_v34 = vmax.f32 %v248_v31, 0.0  ;;  %v434_v35 = vpop.f32.mrb[3].mxu1 }
 0x1f3   :  { %v254_v36 = vpack.c.bf16 %v253_v34, %v253_v34 }
 0x1f5   :  { %452 = vmatmul.mubr.bf16.vlgmr.msra.gmra.mrb[4].mxu0 %v254_v36 }
 0x2c8   :  { %v341_v38 = vpop.f32.mrb[4].mxu0 }
 0x2c9   :  { %v342_v39 = vadd.f32 %v377_v37, %v341_v38  ;;  %v453_v40 = vpop.f32.mrb[5].mxu0 }
 0x2ca   :  { %v344_v41 = vpop.f32.mrb[6].mxu0 }
 0x2cb   :  { %347 = vst [vmem:[#allocation8] sm:$0xff] %v342_v39  ;;  %v454_v42 = vpop.f32.mrb[7].mxu0 }
 0x2cc   :  { %560 = shalt.err (!%p557_p0)
}
 0x2cd   :  { %s561_s3 = scalar_lea.hbm %s697_s4, 128 }
 0x2ce   :  { %p562_p1 = scmp.ne.s32.totalorder %s697_s4, %s561_s3  ;;  %p565_p2 = scmp.lt.u32.totalorder %s561_s3, %s697_s4 }
 0x2d0   :  { %p567_p3 = pnand %p565_p2, %p562_p1 }
 0x2d2   :  { %570 = shalt.err (!%p567_p3)
}
 0x2d3   :  { %357 = dma.vmem_to_hbm [thread:$0]  %s355_s7, 128, %s697_s4, [#allocation4]  }
 0x2d4   :  { %575 = dma.done.wait [#allocation4], 128  }
 0x2d5   :  { %576 = vsyncadd [#allocation4], 4294967168 }
 0x2d6   :  { %361 = vsyncpa [#allocation3], 1 }
 0x2d7   :  { %362 = vsyncpa [#allocation6], 1 }
 0x2d8   :  { %363 = vsyncpa [#allocation4], 1 }

</bundles_post_ra>
